<compile_context>
chip_gen: v6e
topology: v6e:2x2x1
jax: 0.10.0
libtpu: 0.0.40
codegen_flags: <defaults>
</compile_context>

<pallas_src>
import jax
import jax.numpy as jnp
from jax.experimental import pallas as pl
from jax.experimental.pallas import tpu as pltpu

_LANE = 128
_SUBLANE = 8


def _round_up(x, m):
    return ((x + m - 1) // m) * m


def _actor_kernel(ma_ref,
                  s_ref, g_ref,
                  w0s_ref, w0g_ref, b0_ref,
                  w1_ref, b1_ref,
                  w2_ref, b2_ref,
                  w3_ref, b3_ref,
                  out_ref):
    """One batch tile: 3x (matmul + bias + relu) -> matmul + bias + tanh + scale.

    Weights are bf16 [in, out]; activations are cast to bf16 before each MXU
    push; accumulation is f32 via preferred_element_type.
    """
    max_action = ma_ref[0, 0]

    s = s_ref[...].astype(jnp.bfloat16)
    g = g_ref[...].astype(jnp.bfloat16)

    # layer 0 -- concat fused as a split matmul: [s|g] @ W0 == s@W0s + g@W0g
    h = (jnp.dot(s, w0s_ref[...], preferred_element_type=jnp.float32)
         + jnp.dot(g, w0g_ref[...], preferred_element_type=jnp.float32)
         + b0_ref[...])
    h = jnp.maximum(h, 0.0)

    h = jnp.dot(h.astype(jnp.bfloat16), w1_ref[...],
                preferred_element_type=jnp.float32) + b1_ref[...]
    h = jnp.maximum(h, 0.0)

    h = jnp.dot(h.astype(jnp.bfloat16), w2_ref[...],
                preferred_element_type=jnp.float32) + b2_ref[...]
    h = jnp.maximum(h, 0.0)

    a = jnp.dot(h.astype(jnp.bfloat16), w3_ref[...],
                preferred_element_type=jnp.float32) + b3_ref[...]
    out_ref[...] = (max_action * jnp.tanh(a)).astype(out_ref.dtype)


def _xavier_uniform(key, fan_in, fan_out, dtype=jnp.float32):
    # matches nn.init.xavier_uniform_ (bound is symmetric in fan_in/fan_out,
    # so storing the weight as [in, out] is distribution-equivalent).
    bound = (6.0 / (fan_in + fan_out)) ** 0.5
    return jax.random.uniform(key, (fan_in, fan_out), dtype=dtype,
                              minval=-bound, maxval=bound)


def init_actor_params(key, dim_state, dim_goal, dim_hidden, dim_action):
    """Original-shape (unpadded) f32 parameters, weights as [in, out]."""
    k0, k1, k2, k3 = jax.random.split(key, 4)
    d_in = dim_state + dim_goal
    return {
        "w0": _xavier_uniform(k0, d_in, dim_hidden),
        "b0": jnp.zeros((dim_hidden,), jnp.float32),
        "w1": _xavier_uniform(k1, dim_hidden, dim_hidden),
        "b1": jnp.zeros((dim_hidden,), jnp.float32),
        "w2": _xavier_uniform(k2, dim_hidden, dim_hidden),
        "b2": jnp.zeros((dim_hidden,), jnp.float32),
        "w3": _xavier_uniform(k3, dim_hidden, dim_action),
        "b3": jnp.zeros((dim_action,), jnp.float32),
    }


def prepare_actor_params(params, dim_state):
    """One-time layout prep: split w0 into state/goal parts, zero-pad the
    hidden and action dims to 128 lanes (mathematically exact), and cast
    weights to bf16 (biases stay f32 -- added after f32 accumulation)."""
    H = params["w1"].shape[0]
    A = params["w3"].shape[1]
    Hp = _round_up(H, _LANE)
    Ap = _round_up(A, _LANE)

    def pad2(w, rows, cols):
        return jnp.pad(w, ((0, rows - w.shape[0]), (0, cols - w.shape[1])))

    def padw(w, rows, cols):
        return pad2(w, rows, cols).astype(jnp.bfloat16)

    w0 = params["w0"]
    return {
        "w0s": padw(w0[:dim_state, :], dim_state, Hp),
        "w0g": padw(w0[dim_state:, :], w0.shape[0] - dim_state, Hp),
        "b0": pad2(params["b0"].reshape(1, -1), 1, Hp),
        "w1": padw(params["w1"], Hp, Hp),
        "b1": pad2(params["b1"].reshape(1, -1), 1, Hp),
        "w2": padw(params["w2"], Hp, Hp),
        "b2": pad2(params["b2"].reshape(1, -1), 1, Hp),
        "w3": padw(params["w3"], Hp, Ap),
        "b3": pad2(params["b3"].reshape(1, -1), 1, Ap),
    }


def actor_forward(s, g, kparams, max_action, dim_action, *, block_batch=1024):
    """Fused Actor forward. s:[B,Ds], g:[B,Dg] -> actions:[B,dim_action]."""
    B, Ds = s.shape
    Dg = g.shape[1]
    Hp = kparams["w1"].shape[0]
    Ap = kparams["w3"].shape[1]

    # Batch tiling: TB rows per grid step, always a multiple of 8.
    TB = _round_up(min(block_batch, B), _SUBLANE)
    Bp8 = _round_up(B, _SUBLANE)
    if Bp8 > _SUBLANE:
        # Guarantee >=2 grid steps so the "parallel" batch axis can shard
        # across v7x's two TensorCores (no-op on v5e/v6e).
        TB = min(TB, _round_up(pl.cdiv(Bp8, 2), _SUBLANE))
    TB = max(TB, _SUBLANE)
    Bp = _round_up(B, TB)
    if Bp != B:
        s = jnp.pad(s, ((0, Bp - B), (0, 0)))
        g = jnp.pad(g, ((0, Bp - B), (0, 0)))
    grid = (Bp // TB,)

    ma = jnp.full((1, 1), max_action, jnp.float32)

    def act_spec(d):  # batch-tiled activations (pipelined over the grid)
        return pl.BlockSpec((TB, d), lambda i: (i, 0))

    def resident(arr):
        # Whole weight/bias, constant block index -> DMA'd once and kept
        # VMEM-resident; single-buffered since it is never re-fetched.
        return pl.BlockSpec(arr.shape, lambda i: (0, 0),
                            pipeline_mode=pl.Buffered(1))

    smem_scalar = pl.BlockSpec((1, 1), lambda i: (0, 0),
                               memory_space=pltpu.MemorySpace.SMEM)

    flops = 2 * Bp * ((Ds + Dg) * Hp + 2 * Hp * Hp + Hp * Ap)
    bytes_accessed = (4 * Bp * (Ds + Dg + Ap)                       # f32 acts
                      + 2 * ((Ds + Dg) * Hp + 2 * Hp * Hp + Hp * Ap)  # bf16 W
                      + 4 * (3 * Hp + Ap + 1))                        # f32 b
    cost = pl.CostEstimate(flops=flops,
                           transcendentals=Bp * Ap,
                           bytes_accessed=bytes_accessed)

    out = pl.pallas_call(
        _actor_kernel,
        out_shape=jax.ShapeDtypeStruct((Bp, Ap), jnp.float32),
        grid=grid,
        in_specs=[
            smem_scalar,
            act_spec(Ds), act_spec(Dg),
            resident(kparams["w0s"]), resident(kparams["w0g"]),
            resident(kparams["b0"]),
            resident(kparams["w1"]), resident(kparams["b1"]),
            resident(kparams["w2"]), resident(kparams["b2"]),
            resident(kparams["w3"]), resident(kparams["b3"]),
        ],
        out_specs=pl.BlockSpec((TB, Ap), lambda i: (i, 0)),
        compiler_params=pltpu.CompilerParams(
            dimension_semantics=("parallel",)),
        cost_estimate=cost,
    )(ma, s, g,
      kparams["w0s"], kparams["w0g"], kparams["b0"],
      kparams["w1"], kparams["b1"],
      kparams["w2"], kparams["b2"],
      kparams["w3"], kparams["b3"])

    return out[:B, :dim_action]


def actor_reference(s, g, params, max_action):
    """Pure-JAX f32 reference (unpadded params) for correctness checking."""
    x = jnp.concatenate([s, g], axis=-1)
    h = jax.nn.relu(x @ params["w0"] + params["b0"])
    h = jax.nn.relu(h @ params["w1"] + params["b1"])
    h = jax.nn.relu(h @ params["w2"] + params["b2"])
    return max_action * jnp.tanh(h @ params["w3"] + params["b3"])


if __name__ == "__main__":
    # small, forward-consistent shapes
    batch = 8
    dim_state = 24
    dim_goal = 8
    dim_hidden = 32
    dim_action = 8
    max_action = 2.0

    key = jax.random.PRNGKey(0)
    kp, ks, kg = jax.random.split(key, 3)

    params = init_actor_params(kp, dim_state, dim_goal, dim_hidden, dim_action)
    kparams = prepare_actor_params(params, dim_state)

    s = jax.random.normal(ks, (batch, dim_state), jnp.float32)
    g = jax.random.normal(kg, (batch, dim_goal), jnp.float32)

    out = actor_forward(s, g, kparams, max_action, dim_action)
    out = jax.block_until_ready(out)

    ref = actor_reference(s, g, params, max_action)
    assert out.shape == (batch, dim_action), out.shape
    # bf16 weight operands (f32 accumulation) vs f32 reference: loosened tol.
    assert jnp.allclose(out, ref, atol=3e-2, rtol=3e-2), "mismatch vs reference"

    print("KERNEL_OK")
</pallas_src>

<mosaic_0001>
module attributes {stable_mosaic.version = 11 : i64} {
  func.func @_actor_kernel(%arg0: i32, %arg1: memref<1x1xf32, #tpu.memory_space<smem>>, %arg2: memref<8x24xf32, #tpu.memory_space<vmem>>, %arg3: memref<8x8xf32, #tpu.memory_space<vmem>>, %arg4: memref<24x128xbf16, #tpu.memory_space<vmem>>, %arg5: memref<8x128xbf16, #tpu.memory_space<vmem>>, %arg6: memref<1x128xf32, #tpu.memory_space<vmem>>, %arg7: memref<128x128xbf16, #tpu.memory_space<vmem>>, %arg8: memref<1x128xf32, #tpu.memory_space<vmem>>, %arg9: memref<128x128xbf16, #tpu.memory_space<vmem>>, %arg10: memref<1x128xf32, #tpu.memory_space<vmem>>, %arg11: memref<128x128xbf16, #tpu.memory_space<vmem>>, %arg12: memref<1x128xf32, #tpu.memory_space<vmem>>, %arg13: memref<8x128xf32, #tpu.memory_space<vmem>>) attributes {dimension_semantics = [#tpu.dimension_semantics<parallel>], iteration_bounds = array<i64: 1>, scalar_prefetch = 0 : i64, scratch_operands = 0 : i64, tpu.core_type = #tpu.core_type<tc>, window_params = [{transform_indices = @transform_0, window_bounds = array<i64: 1, 1>}, {transform_indices = @transform_1, window_bounds = array<i64: 8, 24>}, {transform_indices = @transform_2, window_bounds = array<i64: 8, 8>}, {pipeline_mode = #tpu.pipeline_mode<synchronous>, transform_indices = @transform_3, window_bounds = array<i64: 24, 128>}, {pipeline_mode = #tpu.pipeline_mode<synchronous>, transform_indices = @transform_4, window_bounds = array<i64: 8, 128>}, {pipeline_mode = #tpu.pipeline_mode<synchronous>, transform_indices = @transform_5, window_bounds = array<i64: 1, 128>}, {pipeline_mode = #tpu.pipeline_mode<synchronous>, transform_indices = @transform_6, window_bounds = array<i64: 128, 128>}, {pipeline_mode = #tpu.pipeline_mode<synchronous>, transform_indices = @transform_7, window_bounds = array<i64: 1, 128>}, {pipeline_mode = #tpu.pipeline_mode<synchronous>, transform_indices = @transform_8, window_bounds = array<i64: 128, 128>}, {pipeline_mode = #tpu.pipeline_mode<synchronous>, transform_indices = @transform_9, window_bounds = array<i64: 1, 128>}, {pipeline_mode = #tpu.pipeline_mode<synchronous>, transform_indices = @transform_10, window_bounds = array<i64: 128, 128>}, {pipeline_mode = #tpu.pipeline_mode<synchronous>, transform_indices = @transform_11, window_bounds = array<i64: 1, 128>}, {transform_indices = @transform_12, window_bounds = array<i64: 8, 128>}]} {
    %c0 = arith.constant 0 : index
    %c0_0 = arith.constant 0 : index
    %0 = memref.load %arg1[%c0, %c0_0] : memref<1x1xf32, #tpu.memory_space<smem>>
    %c0_1 = arith.constant 0 : index
    %c0_2 = arith.constant 0 : index
    %1 = vector.load %arg2[%c0_1, %c0_2] : memref<8x24xf32, #tpu.memory_space<vmem>>, vector<8x24xf32>
    %2 = arith.truncf %1 : vector<8x24xf32> to vector<8x24xbf16>
    %c0_3 = arith.constant 0 : index
    %c0_4 = arith.constant 0 : index
    %3 = vector.load %arg3[%c0_3, %c0_4] : memref<8x8xf32, #tpu.memory_space<vmem>>, vector<8x8xf32>
    %4 = arith.truncf %3 : vector<8x8xf32> to vector<8x8xbf16>
    %c0_5 = arith.constant 0 : index
    %c0_6 = arith.constant 0 : index
    %5 = vector.load %arg4[%c0_5, %c0_6] : memref<24x128xbf16, #tpu.memory_space<vmem>>, vector<24x128xbf16>
    %cst = arith.constant dense<0.000000e+00> : vector<8x128xf32>
    %6 = tpu.matmul %2, %5, %cst {dimension_numbers = #tpu.dot_dimension_numbers<[1], [0], [0], [1], [0, 0, 1, 1], [], []>} : vector<8x24xbf16>, vector<24x128xbf16>, vector<8x128xf32> -> vector<8x128xf32>
    %c0_7 = arith.constant 0 : index
    %c0_8 = arith.constant 0 : index
    %7 = vector.load %arg5[%c0_7, %c0_8] : memref<8x128xbf16, #tpu.memory_space<vmem>>, vector<8x128xbf16>
    %cst_9 = arith.constant dense<0.000000e+00> : vector<8x128xf32>
    %8 = tpu.matmul %4, %7, %cst_9 {dimension_numbers = #tpu.dot_dimension_numbers<[1], [0], [0], [1], [0, 0, 1, 1], [], []>} : vector<8x8xbf16>, vector<8x128xbf16>, vector<8x128xf32> -> vector<8x128xf32>
    %9 = arith.addf %6, %8 : vector<8x128xf32>
    %c0_10 = arith.constant 0 : index
    %c0_11 = arith.constant 0 : index
    %10 = vector.load %arg6[%c0_10, %c0_11] : memref<1x128xf32, #tpu.memory_space<vmem>>, vector<1x128xf32>
    %11 = vector.broadcast %10 : vector<1x128xf32> to vector<8x128xf32>
    %12 = arith.addf %9, %11 : vector<8x128xf32>
    %cst_12 = arith.constant 0.000000e+00 : f32
    %13 = vector.broadcast %cst_12 : f32 to vector<8x128xf32>
    %14 = arith.maximumf %12, %13 : vector<8x128xf32>
    %15 = arith.truncf %14 : vector<8x128xf32> to vector<8x128xbf16>
    %c0_13 = arith.constant 0 : index
    %c0_14 = arith.constant 0 : index
    %16 = vector.load %arg7[%c0_13, %c0_14] : memref<128x128xbf16, #tpu.memory_space<vmem>>, vector<128x128xbf16>
    %cst_15 = arith.constant dense<0.000000e+00> : vector<8x128xf32>
    %17 = tpu.matmul %15, %16, %cst_15 {dimension_numbers = #tpu.dot_dimension_numbers<[1], [0], [0], [1], [0, 0, 1, 1], [], []>} : vector<8x128xbf16>, vector<128x128xbf16>, vector<8x128xf32> -> vector<8x128xf32>
    %c0_16 = arith.constant 0 : index
    %c0_17 = arith.constant 0 : index
    %18 = vector.load %arg8[%c0_16, %c0_17] : memref<1x128xf32, #tpu.memory_space<vmem>>, vector<1x128xf32>
    %19 = vector.broadcast %18 : vector<1x128xf32> to vector<8x128xf32>
    %20 = arith.addf %17, %19 : vector<8x128xf32>
    %cst_18 = arith.constant 0.000000e+00 : f32
    %21 = vector.broadcast %cst_18 : f32 to vector<8x128xf32>
    %22 = arith.maximumf %20, %21 : vector<8x128xf32>
    %23 = arith.truncf %22 : vector<8x128xf32> to vector<8x128xbf16>
    %c0_19 = arith.constant 0 : index
    %c0_20 = arith.constant 0 : index
    %24 = vector.load %arg9[%c0_19, %c0_20] : memref<128x128xbf16, #tpu.memory_space<vmem>>, vector<128x128xbf16>
    %cst_21 = arith.constant dense<0.000000e+00> : vector<8x128xf32>
    %25 = tpu.matmul %23, %24, %cst_21 {dimension_numbers = #tpu.dot_dimension_numbers<[1], [0], [0], [1], [0, 0, 1, 1], [], []>} : vector<8x128xbf16>, vector<128x128xbf16>, vector<8x128xf32> -> vector<8x128xf32>
    %c0_22 = arith.constant 0 : index
    %c0_23 = arith.constant 0 : index
    %26 = vector.load %arg10[%c0_22, %c0_23] : memref<1x128xf32, #tpu.memory_space<vmem>>, vector<1x128xf32>
    %27 = vector.broadcast %26 : vector<1x128xf32> to vector<8x128xf32>
    %28 = arith.addf %25, %27 : vector<8x128xf32>
    %cst_24 = arith.constant 0.000000e+00 : f32
    %29 = vector.broadcast %cst_24 : f32 to vector<8x128xf32>
    %30 = arith.maximumf %28, %29 : vector<8x128xf32>
    %31 = arith.truncf %30 : vector<8x128xf32> to vector<8x128xbf16>
    %c0_25 = arith.constant 0 : index
    %c0_26 = arith.constant 0 : index
    %32 = vector.load %arg11[%c0_25, %c0_26] : memref<128x128xbf16, #tpu.memory_space<vmem>>, vector<128x128xbf16>
    %cst_27 = arith.constant dense<0.000000e+00> : vector<8x128xf32>
    %33 = tpu.matmul %31, %32, %cst_27 {dimension_numbers = #tpu.dot_dimension_numbers<[1], [0], [0], [1], [0, 0, 1, 1], [], []>} : vector<8x128xbf16>, vector<128x128xbf16>, vector<8x128xf32> -> vector<8x128xf32>
    %c0_28 = arith.constant 0 : index
    %c0_29 = arith.constant 0 : index
    %34 = vector.load %arg12[%c0_28, %c0_29] : memref<1x128xf32, #tpu.memory_space<vmem>>, vector<1x128xf32>
    %35 = vector.broadcast %34 : vector<1x128xf32> to vector<8x128xf32>
    %36 = arith.addf %33, %35 : vector<8x128xf32>
    %37 = math.tanh %36 : vector<8x128xf32>
    %38 = vector.broadcast %0 : f32 to vector<8x128xf32>
    %39 = arith.mulf %38, %37 : vector<8x128xf32>
    %c0_30 = arith.constant 0 : index
    %c0_31 = arith.constant 0 : index
    %40 = vector.load %arg13[%c0_30, %c0_31] : memref<8x128xf32, #tpu.memory_space<vmem>>, vector<8x128xf32>
    tpu.vector_store %arg13[%c0_30, %c0_31], %39 {strides = array<i32>} : memref<8x128xf32, #tpu.memory_space<vmem>>, vector<8x128xf32>,
    return
  }
  func.func @transform_0(%arg0: i32) -> (i32, i32) {
    %c0_i32 = arith.constant 0 : i32
    %c0_i32_0 = arith.constant 0 : i32
    %c0_i32_1 = arith.constant 0 : i32
    return %c0_i32, %c0_i32_0 : i32, i32
  }
  func.func @transform_1(%arg0: i32) -> (i32, i32) {
    %c0_i32 = arith.constant 0 : i32
    %c0_i32_0 = arith.constant 0 : i32
    return %arg0, %c0_i32 : i32, i32
  }
  func.func @transform_2(%arg0: i32) -> (i32, i32) {
    %c0_i32 = arith.constant 0 : i32
    %c0_i32_0 = arith.constant 0 : i32
    return %arg0, %c0_i32 : i32, i32
  }
  func.func @transform_3(%arg0: i32) -> (i32, i32) {
    %c0_i32 = arith.constant 0 : i32
    %c0_i32_0 = arith.constant 0 : i32
    %c0_i32_1 = arith.constant 0 : i32
    return %c0_i32, %c0_i32_0 : i32, i32
  }
  func.func @transform_4(%arg0: i32) -> (i32, i32) {
    %c0_i32 = arith.constant 0 : i32
    %c0_i32_0 = arith.constant 0 : i32
    %c0_i32_1 = arith.constant 0 : i32
    return %c0_i32, %c0_i32_0 : i32, i32
  }
  func.func @transform_5(%arg0: i32) -> (i32, i32) {
    %c0_i32 = arith.constant 0 : i32
    %c0_i32_0 = arith.constant 0 : i32
    %c0_i32_1 = arith.constant 0 : i32
    return %c0_i32, %c0_i32_0 : i32, i32
  }
  func.func @transform_6(%arg0: i32) -> (i32, i32) {
    %c0_i32 = arith.constant 0 : i32
    %c0_i32_0 = arith.constant 0 : i32
    %c0_i32_1 = arith.constant 0 : i32
    return %c0_i32, %c0_i32_0 : i32, i32
  }
  func.func @transform_7(%arg0: i32) -> (i32, i32) {
    %c0_i32 = arith.constant 0 : i32
    %c0_i32_0 = arith.constant 0 : i32
    %c0_i32_1 = arith.constant 0 : i32
    return %c0_i32, %c0_i32_0 : i32, i32
  }
  func.func @transform_8(%arg0: i32) -> (i32, i32) {
    %c0_i32 = arith.constant 0 : i32
    %c0_i32_0 = arith.constant 0 : i32
    %c0_i32_1 = arith.constant 0 : i32
    return %c0_i32, %c0_i32_0 : i32, i32
  }
  func.func @transform_9(%arg0: i32) -> (i32, i32) {
    %c0_i32 = arith.constant 0 : i32
    %c0_i32_0 = arith.constant 0 : i32
    %c0_i32_1 = arith.constant 0 : i32
    return %c0_i32, %c0_i32_0 : i32, i32
  }
  func.func @transform_10(%arg0: i32) -> (i32, i32) {
    %c0_i32 = arith.constant 0 : i32
    %c0_i32_0 = arith.constant 0 : i32
    %c0_i32_1 = arith.constant 0 : i32
    return %c0_i32, %c0_i32_0 : i32, i32
  }
  func.func @transform_11(%arg0: i32) -> (i32, i32) {
    %c0_i32 = arith.constant 0 : i32
    %c0_i32_0 = arith.constant 0 : i32
    %c0_i32_1 = arith.constant 0 : i32
    return %c0_i32, %c0_i32_0 : i32, i32
  }
  func.func @transform_12(%arg0: i32) -> (i32, i32) {
    %c0_i32 = arith.constant 0 : i32
    %c0_i32_0 = arith.constant 0 : i32
    return %arg0, %c0_i32 : i32, i32
  }
}

</mosaic_0001>

<bundles_post_ra>
// kernel: tpu_custom_call.1
= control target key start
LH: loop header
LB: loop body
LE: loop exit
PB: predicated region body
PF: predicated region fallthrough
CT: control target
= control target key end

     0   :  { %18 = vsyncpa [#allocation4], 0  ;;  %s1095_s0 = inlined_call_operand.<no memory space> [shape: f32[1,1], index: 0, kind: input, shape index: {}]   ;;  %s1096_s1 = inlined_call_operand.hbm [shape: f32[8,24], index: 1, kind: input, shape index: {}]   ;;  %s1097_s2 = inlined_call_operand.hbm [shape: f32[8,8], index: 2, kind: input, shape index: {}]   ;;  %s1098_s3 = inlined_call_operand.hbm [shape: bf16[24,128], index: 3, kind: input, shape index: {}]   ;;  %s1099_s4 = inlined_call_operand.vmem [shape: bf16[8,128], index: 4, kind: input, shape index: {}]   ;;  %s1100_s5 = inlined_call_operand.vmem [shape: f32[1,128], index: 5, kind: input, shape index: {}]   ;;  %s1101_s6 = inlined_call_operand.hbm [shape: bf16[128,128], index: 6, kind: input, shape index: {}]   ;;  %s1102_s7 = inlined_call_operand.vmem [shape: f32[1,128], index: 7, kind: input, shape index: {}]   ;;  %s1103_s8 = inlined_call_operand.hbm [shape: bf16[128,128], index: 8, kind: input, shape index: {}]   ;;  %s1104_s9 = inlined_call_operand.vmem [shape: f32[1,128], index: 9, kind: input, shape index: {}]   ;;  %s1105_s10 = inlined_call_operand.hbm [shape: bf16[128,128], index: 10, kind: input, shape index: {}]   ;;  %s1106_s11 = inlined_call_operand.vmem [shape: f32[1,128], index: 11, kind: input, shape index: {}]   ;;  %s1107_s12 = inlined_call_operand.hbm [shape: f32[8,128], index: 12, kind: output, shape index: {}]  }
   0x1   :  { %19 = vsyncpa [#allocation7], 0 }
   0x2   :  { %20 = vsyncpa [#allocation10], 0 }
   0x3   :  { %21 = vsyncpa [#allocation13], 0 }
   0x4   :  { %22 = vsyncpa [#allocation5], 0  ;;  %s931_s21 = smov [#allocation6]  }
   0x5   :  { %s41_s22 = sshll.u32 %s931_s21, 4  ;;  %s42_s22 = int_to_ptr.vmem [resolvable:$true] %s41_s22 }
   0x6   :  { %s789_s23 = scalar_lea.vmem %s42_s22, 128  ;;  %p794_p1 = scmp.lt.s32.totalorder %s42_s22, %s42_s22 }
   0x7   :  { %p790_p0 = scmp.ne.s32.totalorder %s42_s22, %s789_s23  ;;  %p795_p2 = scmp.lt.s32.totalorder %s789_s23, %s789_s23 }
   0x9   :  { %p796_p3 = por %p795_p2, %p794_p1 }
   0xb   :  { %p797_p4 = pnand %p796_p3, %p790_p0 }
   0xd   :  { %800 = shalt.err (!%p797_p4)
}
   0xe   :  { %44 = dma.hbm_to_vmem [thread:$0]  %s1097_s2, 128, %s42_s22, [#allocation7]  }
   0xf   :  { %s932_s26 = smov [#allocation9]   ;;  %s933_s28 = smov [#allocation3]  }
  0x10   :  { %s66_s27 = sshll.u32 %s932_s26, 4  ;;  %s31_s29 = sshll.u32 %s933_s28, 4  ;;  %s67_s27 = int_to_ptr.vmem [resolvable:$true] %s66_s27  ;;  %s32_s29 = int_to_ptr.vmem [resolvable:$true] %s31_s29 }
  0x11   :  { %s809_s30 = scalar_lea.vmem %s67_s27, 1024  ;;  %p814_p6 = scmp.lt.s32.totalorder %s67_s27, %s67_s27 }
  0x12   :  { %p810_p5 = scmp.ne.s32.totalorder %s67_s27, %s809_s30  ;;  %p815_p7 = scmp.lt.s32.totalorder %s809_s30, %s809_s30 }
  0x14   :  { %p816_p8 = por %p815_p7, %p814_p6 }
  0x16   :  { %p817_p9 = pnand %p816_p8, %p810_p5 }
  0x18   :  { %820 = shalt.err (!%p817_p9)
}
  0x19   :  { %s934_s13 = smov 64   ;;  %s935_s14 = smov 4  }
  0x1a   :  { %72 = dma.hbm_to_vmem [thread:$0]  %s1101_s6, 1024, %s67_s27, [#allocation10], %s934_s13, %s934_s13, %s935_s14  }
  0x1b   :  { %s829_s2 = scalar_lea.vmem %s32_s29, 128  ;;  %p834_p11 = scmp.lt.s32.totalorder %s32_s29, %s32_s29 }
  0x1c   :  { %p830_p10 = scmp.ne.s32.totalorder %s32_s29, %s829_s2  ;;  %p835_p12 = scmp.lt.s32.totalorder %s829_s2, %s829_s2 }
  0x1e   :  { %p836_p13 = por %p835_p12, %p834_p11 }
  0x20   :  { %p837_p0 = pnand %p836_p13, %p830_p10 }
  0x22   :  { %840 = shalt.err (!%p837_p0)
}
  0x23   :  { %34 = dma.hbm_to_vmem [thread:$0]  %s1096_s1, 128, %s32_s29, [#allocation4]  }
  0x24   :  { %s936_s19 = smov [#allocation8]   ;;  %s937_s21 = smov [#allocation11]  }
  0x25   :  { %s50_s20 = sshll.u32 %s936_s19, 4  ;;  %s80_s22 = sshll.u32 %s937_s21, 4  ;;  %s51_s20 = int_to_ptr.vmem [resolvable:$true] %s50_s20  ;;  %s81_s22 = int_to_ptr.vmem [resolvable:$true] %s80_s22 }
  0x26   :  { %s849_s23 = scalar_lea.vmem %s51_s20, 192  ;;  %p854_p2 = scmp.lt.s32.totalorder %s51_s20, %s51_s20 }
  0x27   :  { %p850_p1 = scmp.ne.s32.totalorder %s51_s20, %s849_s23  ;;  %p855_p3 = scmp.lt.s32.totalorder %s849_s23, %s849_s23 }
  0x29   :  { %p856_p4 = por %p855_p3, %p854_p2 }
  0x2b   :  { %p857_p5 = pnand %p856_p4, %p850_p1 }
  0x2d   :  { %860 = shalt.err (!%p857_p5)
}
  0x2e   :  { %56 = dma.hbm_to_vmem [thread:$0]  %s1098_s3, 192, %s51_s20, [#allocation7], %s934_s13, %s934_s13, %s935_s14  }
  0x2f   :  { %s869_s1 = scalar_lea.vmem %s81_s22, 1024  ;;  %p874_p7 = scmp.lt.s32.totalorder %s81_s22, %s81_s22 }
  0x30   :  { %p870_p6 = scmp.ne.s32.totalorder %s81_s22, %s869_s1  ;;  %p875_p8 = scmp.lt.s32.totalorder %s869_s1, %s869_s1 }
  0x32   :  { %p876_p9 = por %p875_p8, %p874_p7 }
  0x34   :  { %p877_p10 = pnand %p876_p9, %p870_p6 }
  0x36   :  { %880 = shalt.err (!%p877_p10)
}
  0x37   :  { %86 = dma.hbm_to_vmem [thread:$0]  %s1103_s8, 1024, %s81_s22, [#allocation10], %s934_s13, %s934_s13, %s935_s14  }
  0x38   :  { %s938_s27 = smov [#allocation12]  }
  0x39   :  { %s94_s28 = sshll.u32 %s938_s27, 4  ;;  %s95_s28 = int_to_ptr.vmem [resolvable:$true] %s94_s28 }
  0x3a   :  { %s889_s29 = scalar_lea.vmem %s95_s28, 1024  ;;  %p894_p12 = scmp.lt.s32.totalorder %s95_s28, %s95_s28 }
  0x3b   :  { %p890_p11 = scmp.ne.s32.totalorder %s95_s28, %s889_s29  ;;  %p895_p13 = scmp.lt.s32.totalorder %s889_s29, %s889_s29 }
  0x3d   :  { %p896_p0 = por %p895_p13, %p894_p12 }
  0x3f   :  { %p897_p1 = pnand %p896_p0, %p890_p11 }
  0x41   :  { %900 = shalt.err (!%p897_p1)
}
  0x42   :  { %100 = dma.hbm_to_vmem [thread:$0]  %s1105_s10, 1024, %s95_s28, [#allocation13], %s934_s13, %s934_s13, %s935_s14  }
  0x43   :  { %921 = dma.done.wait [#allocation4], 128  }
  0x44   :  { %922 = vsyncadd [#allocation4], 4294967168 }
  0x45   :  { %923 = dma.done.wait [#allocation7], 320  }
  0x46   :  { %924 = vsyncadd [#allocation7], 4294966976 }
  0x47   :  { %925 = dma.done.wait [#allocation10], 2048  }
  0x48   :  { %926 = vsyncadd [#allocation10], 4294965248 }
  0x49   :  { %927 = dma.done.wait [#allocation13], 1024  }
  0x4a   :  { %928 = vsyncadd [#allocation13], 4294966272  ;;  %v939_v0 = vmov 0.0   ;;  %vm940_vm0 = vmmov 0   ;;  %vm135_vm1 = vcmask 1043456   ;;  %v125_v4 = vld [vmem:[#allocation6] sm:$0xff] }
  0x4b   :  { %668 = vmatprep.subr.bf16.mxu1 %v939_v0  ;;  %670 = vmatprep.mubr.msk.bf16.mxu1 %vm940_vm0, %v939_v0  ;;  %v130_v1 = vld [vmem:[%s1099_s4] sm:$0xf]  ;;  %v753_v2 = vld [vmem:[#allocation8 + $0x8] ss:$0 sps:$4 sm:$0xff]   ;;  %v126_v5 = vpack.c.bf16 %v125_v4, %v125_v4  ;;  %vm131_vm2 = vcmask 64512   ;;  %v754_v8 = vld [vmem:[#allocation8] sm:$0xff]  }
  0x4c   :  { %682 = vmatprep.subr.bf16.mxu0 %v939_v0  ;;  %698 = vmatprep.mubr.msk.bf16.mxu0 %vm940_vm0, %v939_v0  ;;  %v137_v3 = vsel %vm135_vm1, %v130_v1, 0  ;;  %v193_v6 = vsel %vm135_vm1, %v753_v2, 0  ;;  %v755_v7 = vld [vmem:[#allocation9 + $0x38] sm:$0xff]   ;;  %v756_v9 = vld [vmem:[#allocation9 + $0x30] sm:$0xff]   ;;  %v123_v10 = vld [vmem:[#allocation3] sm:$0xff]  ;;  %vm188_vm3 = vcmask 195584  }
  0x4d   :  { %669 = vmatpush3.bf16.msra.mxu1 %v137_v3  ;;  %683 = vmatpush3.bf16.msra.mxu0 %v755_v7  ;;  %v757_v11 = vld [vmem:[#allocation9 + $0x28] sm:$0xff]   ;;  %v124_v12 = vpack.c.bf16 %v123_v10, %v123_v10  ;;  %v758_v13 = vld [vmem:[#allocation9 + $0x20] sm:$0xff]   ;;  %v759_v14 = vld [vmem:[#allocation9 + $0x18] sm:$0xff]   ;;  %s941_s18 = smov [#allocation14]  }
  0x4e   :  { %674 = vmatprep.subr.bf16.mxu1 %v939_v0  ;;  %684 = vmatprep.subr.bf16.mxu0 %v939_v0  ;;  %v760_v15 = vld [vmem:[#allocation9 + $0x10] sm:$0xff]   ;;  %v761_v16 = vld [vmem:[#allocation9 + $0x8] sm:$0xff]   ;;  %v762_v17 = vld [vmem:[#allocation9] sm:$0xff]   ;;  %s592_s19 = sshll.u32 %s941_s18, 4  ;;  %s593_s19 = int_to_ptr.vmem [resolvable:$true] %s592_s19 }
  0x4f   :  { %v763_v18 = vld [vmem:[#allocation11 + $0x38] sm:$0xff]   ;;  %v764_v19 = vld [vmem:[#allocation11 + $0x30] sm:$0xff]   ;;  %v765_v20 = vld [vmem:[#allocation11 + $0x28] sm:$0xff]   ;;  %s901_s20 = scalar_lea.vmem %s593_s19, 128  ;;  %p906_p3 = scmp.lt.s32.totalorder %s593_s19, %s593_s19 }
  0x50   :  { %671 = vmatmul.mubr.msk.bf16.vlgmr.msra.gmra.mxu1 %vm131_vm2, %v126_v5  ;;  %v766_v21 = vld [vmem:[#allocation11 + $0x20] sm:$0xff]   ;;  %v767_v22 = vld [vmem:[#allocation11 + $0x18] sm:$0xff]   ;;  %v768_v23 = vld [vmem:[#allocation11 + $0x10] sm:$0xff]   ;;  %v583_v5 = vstv %s1095_s0  ;;  %p902_p2 = scmp.ne.s32.totalorder %s593_s19, %s901_s20  ;;  %p907_p4 = scmp.lt.s32.totalorder %s901_s20, %s901_s20 }
  0x51   :  { %675 = vmatpush3.bf16.msra.mxu1 %v193_v6  ;;  %678 = vmatprep.mubr.msk.bf16.mxu1 %vm940_vm0, %v939_v0  ;;  %v608_v29 = vld [vmem:[%s1100_s5] ss:$0 sm:$0xff]  ;;  %v769_v37 = vld [vmem:[#allocation11 + $0x8] sm:$0xff]   ;;  %v771_v39 = vld [vmem:[#allocation12 + $0x38] sm:$0xff]  }
  0x52   :  { %676 = vmatprep.subr.bf16.mxu1 %v939_v0  ;;  %685 = vmatpush3.bf16.msra.mxu0 %v756_v9  ;;  %v770_v38 = vld [vmem:[#allocation11] sm:$0xff]   ;;  %v772_v40 = vld [vmem:[#allocation12 + $0x30] sm:$0xff]   ;;  %v773_v41 = vld [vmem:[#allocation12 + $0x28] sm:$0xff]   ;;  %p908_p5 = por %p907_p4, %p906_p3 }
  0x53   :  { %686 = vmatprep.subr.bf16.mxu0 %v939_v0  ;;  %v774_v42 = vld [vmem:[#allocation12 + $0x20] sm:$0xff]   ;;  %v775_v43 = vld [vmem:[#allocation12 + $0x18] sm:$0xff]   ;;  %v776_v44 = vld [vmem:[#allocation12 + $0x10] sm:$0xff]  }
  0x54   :  { %v609_v45 = vld [vmem:[%s1102_s7] ss:$0 sm:$0xff]  ;;  %v777_v53 = vld [vmem:[#allocation12 + $0x8] sm:$0xff]   ;;  %p909_p6 = pnand %p908_p5, %p902_p2 }
  0x55   :  { %677 = vmatpush3.bf16.msra.mxu1 %v754_v8  ;;  %v778_v54 = vld [vmem:[#allocation12] sm:$0xff]  }
  0x56   :  { %702 = vmatprep.subr.bf16.mxu1 %v939_v0  ;;  %687 = vmatpush3.bf16.msra.mxu0 %v757_v11  ;;  %v618_v55 = vld [vmem:[%s1104_s9] ss:$0 sm:$0xff] }
  0x57   :  { %688 = vmatprep.subr.bf16.mxu0 %v939_v0  ;;  %v627_v63 = vld [vmem:[%s1106_s11] ss:$0 sm:$0xff] }
  0x58   :  { %679 = vmatmul.mubr.msk.bf16.vlgmr.msra.gmra.mxu1 %vm188_vm3, %v124_v12 }
  0x59   :  { %718 = vmatprep.mubr.msk.bf16.mxu1 %vm940_vm0, %v939_v0  ;;  %703 = vmatpush3.bf16.msra.mxu1 %v763_v18 }
  0x5a   :  { %689 = vmatpush3.bf16.msra.mxu0 %v758_v13  ;;  %704 = vmatprep.subr.bf16.mxu1 %v939_v0 }
  0x5b   :  { %690 = vmatprep.subr.bf16.mxu0 %v939_v0 }
  0x5d   :  { %705 = vmatpush3.bf16.msra.mxu1 %v764_v19 }
  0x5e   :  { %691 = vmatpush3.bf16.msra.mxu0 %v759_v14  ;;  %706 = vmatprep.subr.bf16.mxu1 %v939_v0 }
  0x5f   :  { %692 = vmatprep.subr.bf16.mxu0 %v939_v0 }
  0x61   :  { %707 = vmatpush3.bf16.msra.mxu1 %v765_v20 }
  0x62   :  { %693 = vmatpush3.bf16.msra.mxu0 %v760_v15  ;;  %708 = vmatprep.subr.bf16.mxu1 %v939_v0 }
  0x63   :  { %694 = vmatprep.subr.bf16.mxu0 %v939_v0 }
  0x65   :  { %709 = vmatpush3.bf16.msra.mxu1 %v766_v21 }
  0x66   :  { %695 = vmatpush3.bf16.msra.mxu0 %v761_v16  ;;  %710 = vmatprep.subr.bf16.mxu1 %v939_v0 }
  0x67   :  { %696 = vmatprep.subr.bf16.mxu0 %v939_v0 }
  0x69   :  { %711 = vmatpush3.bf16.msra.mxu1 %v767_v22 }
  0x6a   :  { %697 = vmatpush3.bf16.msra.mxu0 %v762_v17  ;;  %712 = vmatprep.subr.bf16.mxu1 %v939_v0 }
  0x6b   :  { %722 = vmatprep.subr.bf16.mxu0 %v939_v0 }
  0x6d   :  { %713 = vmatpush3.bf16.msra.mxu1 %v768_v23 }
  0x6e   :  { %714 = vmatprep.subr.bf16.mxu1 %v939_v0 }
  0x71   :  { %715 = vmatpush3.bf16.msra.mxu1 %v769_v37 }
  0x72   :  { %716 = vmatprep.subr.bf16.mxu1 %v939_v0 }
  0x75   :  { %717 = vmatpush3.bf16.msra.mxu1 %v770_v38 }
 0x110   :  { %v173_v24 = vpop.f32.mrf.mxu1 }
 0x112   :  { %v672_v25 = vpop.f32.mrf.mxu1 }
 0x114   :  { %v176_v26 = vpop.f32.mrf.mxu1 }
 0x116   :  { %v673_v27 = vpop.f32.mrf.mxu1 }
 0x118   :  { %v229_v28 = vpop.f32.mrf.mxu1 }
 0x119   :  { %v230_v30 = vadd.f32 %v229_v28, %v173_v24 }
 0x11a   :  { %v680_v31 = vpop.f32.mrf.mxu1 }
 0x11b   :  { %v242_v32 = vadd.f32 %v608_v29, %v230_v30 }
 0x11c   :  { %v232_v33 = vpop.f32.mrf.mxu1 }
 0x11d   :  { %v243_v34 = vmax.f32 %v242_v32, 0.0 }
 0x11e   :  { %v681_v35 = vpop.f32.mrf.mxu1 }
 0x11f   :  { %v244_v36 = vpack.c.bf16 %v243_v34, %v243_v34 }
 0x121   :  { %699 = vmatmul.mubr.bf16.vlgmr.msra.gmra.mxu0 %v244_v36 }
 0x122   :  { %738 = vmatprep.mubr.msk.bf16.mxu0 %vm940_vm0, %v939_v0  ;;  %723 = vmatpush3.bf16.msra.mxu0 %v771_v39 }
 0x123   :  { %724 = vmatprep.subr.bf16.mxu0 %v939_v0 }
 0x126   :  { %725 = vmatpush3.bf16.msra.mxu0 %v772_v40 }
 0x127   :  { %726 = vmatprep.subr.bf16.mxu0 %v939_v0 }
 0x12a   :  { %727 = vmatpush3.bf16.msra.mxu0 %v773_v41 }
 0x12b   :  { %728 = vmatprep.subr.bf16.mxu0 %v939_v0 }
 0x12e   :  { %729 = vmatpush3.bf16.msra.mxu0 %v774_v42 }
 0x12f   :  { %730 = vmatprep.subr.bf16.mxu0 %v939_v0 }
 0x132   :  { %731 = vmatpush3.bf16.msra.mxu0 %v775_v43 }
 0x133   :  { %732 = vmatprep.subr.bf16.mxu0 %v939_v0 }
 0x136   :  { %733 = vmatpush3.bf16.msra.mxu0 %v776_v44 }
 0x137   :  { %734 = vmatprep.subr.bf16.mxu0 %v939_v0 }
 0x13a   :  { %735 = vmatpush3.bf16.msra.mxu0 %v777_v53 }
 0x13b   :  { %736 = vmatprep.subr.bf16.mxu0 %v939_v0 }
 0x13e   :  { %737 = vmatpush3.bf16.msra.mxu0 %v778_v54 }
 0x1e1   :  { %v350_v46 = vpop.f32.mrf.mxu0 }
 0x1e2   :  { %v351_v47 = vadd.f32 %v609_v45, %v350_v46 }
 0x1e3   :  { %v700_v48 = vpop.f32.mrf.mxu0 }
 0x1e4   :  { %v356_v49 = vmax.f32 %v351_v47, 0.0 }
 0x1e5   :  { %v353_v50 = vpop.f32.mrf.mxu0 }
 0x1e6   :  { %v357_v51 = vpack.c.bf16 %v356_v49, %v356_v49 }
 0x1e7   :  { %v701_v52 = vpop.f32.mrf.mxu0 }
 0x1e8   :  { %719 = vmatmul.mubr.bf16.vlgmr.msra.gmra.mxu1 %v357_v51 }
 0x2a8   :  { %v463_v56 = vpop.f32.mrf.mxu1 }
 0x2a9   :  { %v464_v57 = vadd.f32 %v618_v55, %v463_v56 }
 0x2aa   :  { %v720_v58 = vpop.f32.mrf.mxu1 }
 0x2ab   :  { %v469_v59 = vmax.f32 %v464_v57, 0.0 }
 0x2ac   :  { %v466_v60 = vpop.f32.mrf.mxu1 }
 0x2ad   :  { %v470_v61 = vpack.c.bf16 %v469_v59, %v469_v59 }
 0x2ae   :  { %v721_v62 = vpop.f32.mrf.mxu1 }
 0x2af   :  { %739 = vmatmul.mubr.bf16.vlgmr.msra.gmra.mxu0 %v470_v61 }
 0x36f   :  { %v576_v1 = vpop.f32.mrf.mxu0 }
 0x370   :  { %v577_v0 = vadd.f32 %v627_v63, %v576_v1 }
 0x371   :  { %v740_v2 = vpop.f32.mrf.mxu0 }
 0x372   :  { %779 = vtanh.f32 %v577_v0 }
 0x373   :  { %v579_v3 = vpop.f32.mrf.mxu0 }
 0x375   :  { %v741_v4 = vpop.f32.mrf.mxu0 }
 0x37f   :  { %v780_v6 = vpop.eup %779 }
 0x380   :  { %v584_v7 = vmul.f32 %v780_v6, %v583_v5 }
 0x382   :  { %585 = vst [vmem:[#allocation14] sm:$0xff] %v584_v7 }
 0x383   :  { %912 = shalt.err (!%p909_p6)
}
 0x384   :  { %595 = dma.vmem_to_hbm [thread:$0]  %s593_s19, 128, %s1107_s12, [#allocation5]  }
 0x385   :  { %929 = dma.done.wait [#allocation5], 128  }
 0x386   :  { %930 = vsyncadd [#allocation5], 4294967168 }
 0x387   :  { %599 = vsyncpa [#allocation4], 1 }
 0x388   :  { %600 = vsyncpa [#allocation7], 1 }
 0x389   :  { %601 = vsyncpa [#allocation10], 1 }
 0x38a   :  { %602 = vsyncpa [#allocation13], 1 }
 0x38b   :  { %603 = vsyncpa [#allocation5], 1 }

</bundles_post_ra>
